<compile_context>
chip_gen: v7x
topology: tpu7x:2x2x1
jax: 0.10.0
libtpu: 0.0.40
codegen_flags: <defaults>
</compile_context>

<pallas_src>
import functools

import jax
import jax.numpy as jnp
from jax.experimental import pallas as pl
from jax.experimental.pallas import tpu as pltpu


def msa_kernel(x_ref, bias_ref, wqkv_ref, bqkv_ref, wo_ref, bo_ref, o_ref,
               *, num_heads, head_dim):
    # x_ref:    (1, N, C)       bias_ref: (1, N, N)  additive mask bias (0 / -1e9)
    # wqkv_ref: (3, C, C)       bqkv_ref: (3, 1, C)  stacked W.T; scale folded into Q
    # wo_ref:   (C, C)          bo_ref:   (1, C)
    # o_ref:    (1, N, C)
    H, hd = num_heads, head_dim
    x = x_ref[0]                                    # (N, C)
    N, C = x.shape

    # --- Q/K/V projections: three single 2-D MXU matmuls (no per-head split,
    #     no lane-axis slicing).  Scale is already folded into the Q weights.
    q = jnp.dot(x, wqkv_ref[0], preferred_element_type=jnp.float32) + bqkv_ref[0]
    k = jnp.dot(x, wqkv_ref[1], preferred_element_type=jnp.float32) + bqkv_ref[1]
    v = jnp.dot(x, wqkv_ref[2], preferred_element_type=jnp.float32) + bqkv_ref[2]

    # --- heads to the leading (batch) axis only for the per-head contractions.
    def split_heads(t):                             # (N, C) -> (H, N, hd)
        return jnp.transpose(t.reshape(N, H, hd), (1, 0, 2))

    qh = split_heads(q)
    kh = split_heads(k)
    vh = split_heads(v)

    # Attention scores for all heads at once: (H, N, N).
    s = jnp.einsum('hnd,hmd->hnm', qh, kh, preferred_element_type=jnp.float32)

    # Precomputed additive mask bias (== masked_fill(mask == 0, -1e9) after softmax).
    s = s + bias_ref[0][None, :, :]

    # Numerically stable softmax; approximate reciprocal goes to the EUP slot.
    s = s - jnp.max(s, axis=-1, keepdims=True)
    p = jnp.exp(s)
    p = p * pl.reciprocal(jnp.sum(p, axis=-1, keepdims=True), approx=True)

    ctx = jnp.einsum('hnm,hmd->hnd', p, vh, preferred_element_type=jnp.float32)  # (H, N, hd)

    # Head concat folded into a single 2-D output projection (MXU-internal
    # accumulation over the full C = H*hd contraction).
    ctx2d = jnp.transpose(ctx, (1, 0, 2)).reshape(N, C)                           # (N, C)
    out = jnp.dot(ctx2d, wo_ref[...], preferred_element_type=jnp.float32) + bo_ref[...]
    o_ref[0] = out.astype(o_ref.dtype)


def msa_forward(x, mask, params, num_heads):
    B, N, C = x.shape
    H = num_heads
    hd = C // H
    scale = hd ** (-0.5)

    wq, bq, wk, bk, wv, bv, wo, bo = params

    # ---- one-time wrapper-side repack (free HBM-side layout plumbing) ----
    # nn.Linear: y = x @ W.T + b.  Fold 1/sqrt(hd) into the Q projection.
    w_qkv = jnp.stack([wq.T * scale, wk.T, wv.T], axis=0)                # (3, C, C)
    b_qkv = jnp.stack([(bq * scale).reshape(1, C),
                       bk.reshape(1, C),
                       bv.reshape(1, C)], axis=0)                        # (3, 1, C)
    wo_t = wo.T                                                          # (C, C)
    bo_r = bo.reshape(1, C)                                              # (1, C)

    # Additive mask bias with the same exact-zero semantics as PyTorch's
    # masked_fill(mask == 0, -1e9).
    if mask is None:
        bias = jnp.zeros((B, N, N), jnp.float32)
    else:
        bias = jnp.where(mask == 0, jnp.float32(-1e9), jnp.float32(0.0))

    kernel = functools.partial(msa_kernel, num_heads=H, head_dim=hd)

    def const_spec(shape):
        # Grid-invariant (weight) blocks: constant index map.
        return pl.BlockSpec(shape, lambda b, _n=len(shape): (0,) * _n)

    return pl.pallas_call(
        kernel,
        out_shape=jax.ShapeDtypeStruct((B, N, C), x.dtype),
        grid_spec=pltpu.PrefetchScalarGridSpec(
            num_scalar_prefetch=0,
            grid=(B,),
            in_specs=[
                pl.BlockSpec((1, N, C), lambda b: (b, 0, 0)),    # x
                pl.BlockSpec((1, N, N), lambda b: (b, 0, 0)),    # additive mask bias
                const_spec((3, C, C)),                           # stacked Q/K/V weights (W.T)
                const_spec((3, 1, C)),                           # stacked Q/K/V biases
                const_spec((C, C)),                              # output projection (W.T)
                const_spec((1, C)),                              # output bias
            ],
            out_specs=pl.BlockSpec((1, N, C), lambda b: (b, 0, 0)),
        ),
        compiler_params=pltpu.CompilerParams(
            dimension_semantics=("parallel",)),      # batch shards across v7x's 2 TCs
    )(x, bias, w_qkv, b_qkv, wo_t, bo_r)


def msa_reference(x, mask, params, num_heads):
    """Pure-JAX reference mirroring the PyTorch forward."""
    B, N, C = x.shape
    head_dim = C // num_heads
    scale = head_dim ** (-0.5)
    wq, bq, wk, bk, wv, bv, wo, bo = params

    def proj(x, w, b):
        return x @ w.T + b

    q = proj(x, wq, bq).reshape(B, N, num_heads, head_dim).transpose(0, 2, 1, 3)
    k = proj(x, wk, bk).reshape(B, N, num_heads, head_dim).transpose(0, 2, 1, 3)
    v = proj(x, wv, bv).reshape(B, N, num_heads, head_dim).transpose(0, 2, 1, 3)

    attn = jnp.einsum("bhqd,bhkd->bhqk", q, k) * scale
    if mask is not None:
        m = mask[:, None, :, :]                      # unsqueeze(1)
        attn = jnp.where(m == 0, -1e9, attn)
    attn = jax.nn.softmax(attn, axis=-1)
    out = jnp.einsum("bhqk,bhkd->bhqd", attn, v)
    out = out.transpose(0, 2, 1, 3).reshape(B, N, C)
    return out @ wo.T + bo


if __name__ == "__main__":
    B, N, C, H = 2, 8, 32, 4

    key = jax.random.PRNGKey(0)
    keys = jax.random.split(key, 10)

    # Deterministic parameter init (nn.Linear shapes: W (out,in), b (out,))
    wq = jax.random.normal(keys[0], (C, C), jnp.float32) * 0.05
    bq = jax.random.normal(keys[1], (C,), jnp.float32) * 0.05
    wk = jax.random.normal(keys[2], (C, C), jnp.float32) * 0.05
    bk = jax.random.normal(keys[3], (C,), jnp.float32) * 0.05
    wv = jax.random.normal(keys[4], (C, C), jnp.float32) * 0.05
    bv = jax.random.normal(keys[5], (C,), jnp.float32) * 0.05
    wo = jax.random.normal(keys[6], (C, C), jnp.float32) * 0.05
    bo = jax.random.normal(keys[7], (C,), jnp.float32) * 0.05
    params = (wq, bq, wk, bk, wv, bv, wo, bo)

    x = jax.random.normal(keys[8], (B, N, C), jnp.float32)
    # Random 0/1 mask (float32), broadcast over heads like PyTorch's unsqueeze(1).
    mask = (jax.random.uniform(keys[9], (B, N, N)) > 0.3).astype(jnp.float32)
    # Ensure every query row attends to at least itself (avoid all-masked rows).
    mask = jnp.maximum(mask, jnp.eye(N, dtype=jnp.float32)[None])

    out = msa_forward(x, mask, params, H)
    jax.block_until_ready(out)

    ref = msa_reference(x, mask, params, H)
    assert out.shape == (B, N, C)
    # Tolerance slightly looser than f32 epsilon to accommodate the EUP
    # approximate reciprocal in the in-kernel softmax normalization and the
    # wrapper-side scale folding.
    assert jnp.allclose(out, ref, atol=2e-3, rtol=2e-3), "mismatch vs reference"

    print("KERNEL_OK")
</pallas_src>

<mosaic_0001>
module attributes {stable_mosaic.version = 11 : i64} {
  func.func @msa_kernel(%arg0: i32, %arg1: memref<1x8x32xf32, #tpu.memory_space<vmem>>, %arg2: memref<1x8x8xf32, #tpu.memory_space<vmem>>, %arg3: memref<3x32x32xf32, #tpu.memory_space<vmem>>, %arg4: memref<3x1x32xf32, #tpu.memory_space<vmem>>, %arg5: memref<32x32xf32, #tpu.memory_space<vmem>>, %arg6: memref<1x32xf32, #tpu.memory_space<vmem>>, %arg7: memref<1x8x32xf32, #tpu.memory_space<vmem>>) attributes {dimension_semantics = [#tpu.dimension_semantics<parallel>], iteration_bounds = array<i64: 2>, scalar_prefetch = 0 : i64, scratch_operands = 0 : i64, tpu.core_type = #tpu.core_type<tc>, window_params = [{transform_indices = @transform_0, window_bounds = array<i64: 1, 8, 32>}, {transform_indices = @transform_1, window_bounds = array<i64: 1, 8, 8>}, {pipeline_mode = #tpu.pipeline_mode<synchronous>, transform_indices = @transform_2, window_bounds = array<i64: 3, 32, 32>}, {pipeline_mode = #tpu.pipeline_mode<synchronous>, transform_indices = @transform_3, window_bounds = array<i64: 3, 1, 32>}, {pipeline_mode = #tpu.pipeline_mode<synchronous>, transform_indices = @transform_4, window_bounds = array<i64: 32, 32>}, {pipeline_mode = #tpu.pipeline_mode<synchronous>, transform_indices = @transform_5, window_bounds = array<i64: 1, 32>}, {transform_indices = @transform_6, window_bounds = array<i64: 1, 8, 32>}]} {
    %c0 = arith.constant 0 : index
    %c0_0 = arith.constant 0 : index
    %c0_1 = arith.constant 0 : index
    %0 = vector.load %arg1[%c0, %c0_0, %c0_1] : memref<1x8x32xf32, #tpu.memory_space<vmem>>, vector<1x8x32xf32>
    %1 = vector.shape_cast %0 : vector<1x8x32xf32> to vector<8x32xf32>
    %c0_2 = arith.constant 0 : index
    %c0_3 = arith.constant 0 : index
    %c0_4 = arith.constant 0 : index
    %2 = vector.load %arg3[%c0_2, %c0_3, %c0_4] : memref<3x32x32xf32, #tpu.memory_space<vmem>>, vector<1x32x32xf32>
    %3 = vector.shape_cast %2 : vector<1x32x32xf32> to vector<32x32xf32>
    %cst = arith.constant dense<0.000000e+00> : vector<8x32xf32>
    %4 = tpu.matmul %1, %3, %cst {dimension_numbers = #tpu.dot_dimension_numbers<[1], [0], [0], [1], [0, 0, 1, 1], [], []>} : vector<8x32xf32>, vector<32x32xf32>, vector<8x32xf32> -> vector<8x32xf32>
    %c0_5 = arith.constant 0 : index
    %c0_6 = arith.constant 0 : index
    %c0_7 = arith.constant 0 : index
    %5 = vector.load %arg4[%c0_5, %c0_6, %c0_7] : memref<3x1x32xf32, #tpu.memory_space<vmem>>, vector<1x1x32xf32>
    %6 = vector.shape_cast %5 : vector<1x1x32xf32> to vector<1x32xf32>
    %7 = vector.broadcast %6 : vector<1x32xf32> to vector<8x32xf32>
    %8 = arith.addf %4, %7 : vector<8x32xf32>
    %c1 = arith.constant 1 : index
    %c0_8 = arith.constant 0 : index
    %c0_9 = arith.constant 0 : index
    %9 = vector.load %arg3[%c1, %c0_8, %c0_9] : memref<3x32x32xf32, #tpu.memory_space<vmem>>, vector<1x32x32xf32>
    %10 = vector.shape_cast %9 : vector<1x32x32xf32> to vector<32x32xf32>
    %cst_10 = arith.constant dense<0.000000e+00> : vector<8x32xf32>
    %11 = tpu.matmul %1, %10, %cst_10 {dimension_numbers = #tpu.dot_dimension_numbers<[1], [0], [0], [1], [0, 0, 1, 1], [], []>} : vector<8x32xf32>, vector<32x32xf32>, vector<8x32xf32> -> vector<8x32xf32>
    %c1_11 = arith.constant 1 : index
    %c0_12 = arith.constant 0 : index
    %c0_13 = arith.constant 0 : index
    %12 = vector.load %arg4[%c1_11, %c0_12, %c0_13] : memref<3x1x32xf32, #tpu.memory_space<vmem>>, vector<1x1x32xf32>
    %13 = vector.shape_cast %12 : vector<1x1x32xf32> to vector<1x32xf32>
    %14 = vector.broadcast %13 : vector<1x32xf32> to vector<8x32xf32>
    %15 = arith.addf %11, %14 : vector<8x32xf32>
    %c2 = arith.constant 2 : index
    %c0_14 = arith.constant 0 : index
    %c0_15 = arith.constant 0 : index
    %16 = vector.load %arg3[%c2, %c0_14, %c0_15] : memref<3x32x32xf32, #tpu.memory_space<vmem>>, vector<1x32x32xf32>
    %17 = vector.shape_cast %16 : vector<1x32x32xf32> to vector<32x32xf32>
    %cst_16 = arith.constant dense<0.000000e+00> : vector<8x32xf32>
    %18 = tpu.matmul %1, %17, %cst_16 {dimension_numbers = #tpu.dot_dimension_numbers<[1], [0], [0], [1], [0, 0, 1, 1], [], []>} : vector<8x32xf32>, vector<32x32xf32>, vector<8x32xf32> -> vector<8x32xf32>
    %c2_17 = arith.constant 2 : index
    %c0_18 = arith.constant 0 : index
    %c0_19 = arith.constant 0 : index
    %19 = vector.load %arg4[%c2_17, %c0_18, %c0_19] : memref<3x1x32xf32, #tpu.memory_space<vmem>>, vector<1x1x32xf32>
    %20 = vector.shape_cast %19 : vector<1x1x32xf32> to vector<1x32xf32>
    %21 = vector.broadcast %20 : vector<1x32xf32> to vector<8x32xf32>
    %22 = arith.addf %18, %21 : vector<8x32xf32>
    %23 = vector.shape_cast %8 : vector<8x32xf32> to vector<8x4x8xf32>
    %24 = tpu.transpose %23, [1, 0, 2] : vector<8x4x8xf32> -> vector<4x8x8xf32>
    %25 = vector.shape_cast %15 : vector<8x32xf32> to vector<8x4x8xf32>
    %26 = tpu.transpose %25, [1, 0, 2] : vector<8x4x8xf32> -> vector<4x8x8xf32>
    %27 = vector.shape_cast %22 : vector<8x32xf32> to vector<8x4x8xf32>
    %28 = tpu.transpose %27, [1, 0, 2] : vector<8x4x8xf32> -> vector<4x8x8xf32>
    "tpu.trace_start"() <{level = 10 : i32, message = "hnd,hmd->hnm"}> : () -> ()
    %cst_20 = arith.constant dense<0.000000e+00> : vector<4x8x8xf32>
    %29 = tpu.matmul %24, %26, %cst_20 {dimension_numbers = #tpu.dot_dimension_numbers<[2], [2], [1], [1], [0, 0, 0, 1, 1, 1], [0], [0]>} : vector<4x8x8xf32>, vector<4x8x8xf32>, vector<4x8x8xf32> -> vector<4x8x8xf32>
    "tpu.trace_stop"() : () -> ()
    %c0_21 = arith.constant 0 : index
    %c0_22 = arith.constant 0 : index
    %c0_23 = arith.constant 0 : index
    %30 = vector.load %arg2[%c0_21, %c0_22, %c0_23] : memref<1x8x8xf32, #tpu.memory_space<vmem>>, vector<1x8x8xf32>
    %31 = vector.shape_cast %30 : vector<1x8x8xf32> to vector<8x8xf32>
    %32 = vector.shape_cast %31 : vector<8x8xf32> to vector<1x8x8xf32>
    %33 = vector.broadcast %32 : vector<1x8x8xf32> to vector<4x8x8xf32>
    %34 = arith.addf %29, %33 : vector<4x8x8xf32>
    %cst_24 = arith.constant dense<0xFF800000> : vector<4x8xf32>
    %35 = vector.multi_reduction <maximumf>, %34, %cst_24 [2] : vector<4x8x8xf32> to vector<4x8xf32>
    %36 = vector.shape_cast %35 : vector<4x8xf32> to vector<4x8x1xf32>
    %37 = vector.broadcast %36 : vector<4x8x1xf32> to vector<4x8x8xf32>
    %38 = arith.subf %34, %37 : vector<4x8x8xf32>
    %39 = math.exp %38 : vector<4x8x8xf32>
    %cst_25 = arith.constant dense<0.000000e+00> : vector<4x8xf32>
    %40 = vector.multi_reduction <add>, %39, %cst_25 [2] : vector<4x8x8xf32> to vector<4x8xf32>
    %41 = vector.shape_cast %40 : vector<4x8xf32> to vector<4x8x1xf32>
    %42 = tpu.reciprocal %41 {approx = true} : vector<4x8x1xf32> -> vector<4x8x1xf32>
    %43 = vector.broadcast %42 : vector<4x8x1xf32> to vector<4x8x8xf32>
    %44 = arith.mulf %39, %43 : vector<4x8x8xf32>
    "tpu.trace_start"() <{level = 10 : i32, message = "hnm,hmd->hnd"}> : () -> ()
    %cst_26 = arith.constant dense<0.000000e+00> : vector<4x8x8xf32>
    %45 = tpu.matmul %44, %28, %cst_26 {dimension_numbers = #tpu.dot_dimension_numbers<[2], [1], [1], [2], [0, 0, 0, 1, 1, 2], [0], [0]>} : vector<4x8x8xf32>, vector<4x8x8xf32>, vector<4x8x8xf32> -> vector<4x8x8xf32>
    "tpu.trace_stop"() : () -> ()
    %46 = tpu.transpose %45, [1, 0, 2] : vector<4x8x8xf32> -> vector<8x4x8xf32>
    %47 = vector.shape_cast %46 : vector<8x4x8xf32> to vector<8x32xf32>
    %c0_27 = arith.constant 0 : index
    %c0_28 = arith.constant 0 : index
    %48 = vector.load %arg5[%c0_27, %c0_28] : memref<32x32xf32, #tpu.memory_space<vmem>>, vector<32x32xf32>
    %cst_29 = arith.constant dense<0.000000e+00> : vector<8x32xf32>
    %49 = tpu.matmul %47, %48, %cst_29 {dimension_numbers = #tpu.dot_dimension_numbers<[1], [0], [0], [1], [0, 0, 1, 1], [], []>} : vector<8x32xf32>, vector<32x32xf32>, vector<8x32xf32> -> vector<8x32xf32>
    %c0_30 = arith.constant 0 : index
    %c0_31 = arith.constant 0 : index
    %50 = vector.load %arg6[%c0_30, %c0_31] : memref<1x32xf32, #tpu.memory_space<vmem>>, vector<1x32xf32>
    %51 = vector.broadcast %50 : vector<1x32xf32> to vector<8x32xf32>
    %52 = arith.addf %49, %51 : vector<8x32xf32>
    %c0_32 = arith.constant 0 : index
    %c0_33 = arith.constant 0 : index
    %c0_34 = arith.constant 0 : index
    %53 = vector.load %arg7[%c0_32, %c0_33, %c0_34] : memref<1x8x32xf32, #tpu.memory_space<vmem>>, vector<1x8x32xf32>
    %54 = vector.shape_cast %53 : vector<1x8x32xf32> to vector<8x32xf32>
    %55 = vector.shape_cast %52 : vector<8x32xf32> to vector<1x8x32xf32>
    tpu.vector_store %arg7[%c0_32, %c0_33, %c0_34], %55 {strides = array<i32>} : memref<1x8x32xf32, #tpu.memory_space<vmem>>, vector<1x8x32xf32>,
    return
  }
  func.func @transform_0(%arg0: i32) -> (i32, i32, i32) {
    %c0_i32 = arith.constant 0 : i32
    %c0_i32_0 = arith.constant 0 : i32
    %c0_i32_1 = arith.constant 0 : i32
    return %arg0, %c0_i32, %c0_i32_0 : i32, i32, i32
  }
  func.func @transform_1(%arg0: i32) -> (i32, i32, i32) {
    %c0_i32 = arith.constant 0 : i32
    %c0_i32_0 = arith.constant 0 : i32
    %c0_i32_1 = arith.constant 0 : i32
    return %arg0, %c0_i32, %c0_i32_0 : i32, i32, i32
  }
  func.func @transform_2(%arg0: i32) -> (i32, i32, i32) {
    %c0_i32 = arith.constant 0 : i32
    %c0_i32_0 = arith.constant 0 : i32
    %c0_i32_1 = arith.constant 0 : i32
    %c0_i32_2 = arith.constant 0 : i32
    return %c0_i32, %c0_i32_0, %c0_i32_1 : i32, i32, i32
  }
  func.func @transform_3(%arg0: i32) -> (i32, i32, i32) {
    %c0_i32 = arith.constant 0 : i32
    %c0_i32_0 = arith.constant 0 : i32
    %c0_i32_1 = arith.constant 0 : i32
    %c0_i32_2 = arith.constant 0 : i32
    return %c0_i32, %c0_i32_0, %c0_i32_1 : i32, i32, i32
  }
  func.func @transform_4(%arg0: i32) -> (i32, i32) {
    %c0_i32 = arith.constant 0 : i32
    %c0_i32_0 = arith.constant 0 : i32
    %c0_i32_1 = arith.constant 0 : i32
    return %c0_i32, %c0_i32_0 : i32, i32
  }
  func.func @transform_5(%arg0: i32) -> (i32, i32) {
    %c0_i32 = arith.constant 0 : i32
    %c0_i32_0 = arith.constant 0 : i32
    %c0_i32_1 = arith.constant 0 : i32
    return %c0_i32, %c0_i32_0 : i32, i32
  }
  func.func @transform_6(%arg0: i32) -> (i32, i32, i32) {
    %c0_i32 = arith.constant 0 : i32
    %c0_i32_0 = arith.constant 0 : i32
    %c0_i32_1 = arith.constant 0 : i32
    return %arg0, %c0_i32, %c0_i32_0 : i32, i32, i32
  }
}

</mosaic_0001>

<bundles_post_ra>
// kernel: tpu_custom_call.1
= control target key start
LH: loop header
LB: loop body
LE: loop exit
PB: predicated region body
PF: predicated region fallthrough
CT: control target
= control target key end

     0   :  { %s3017_s0 = inlined_call_operand.hbm [shape: f32[2,8,32], index: 0, kind: input, shape index: {}]   ;;  %s3018_s1 = inlined_call_operand.hbm [shape: f32[2,8,8], index: 1, kind: input, shape index: {}]   ;;  %s3019_s2 = inlined_call_operand.hbm [shape: f32[3,32,32], index: 2, kind: input, shape index: {}]   ;;  %s3020_s3 = inlined_call_operand.vmem [shape: f32[3,1,32], index: 3, kind: input, shape index: {}]   ;;  %s3021_s4 = inlined_call_operand.hbm [shape: f32[32,32], index: 4, kind: input, shape index: {}]   ;;  %s3022_s5 = inlined_call_operand.vmem [shape: f32[1,32], index: 5, kind: input, shape index: {}]   ;;  %s3023_s6 = inlined_call_operand.hbm [shape: f32[2,8,32], index: 6, kind: output, shape index: {}]  }
   0x1   :  { %3028 = sst [smem:[#allocation17_spill]] %s3019_s2 }
   0x2   :  { %3029 = sst [smem:[#allocation18_spill]] %s3021_s4 }
   0x3   :  { %11 = vsyncpa [#allocation3], 0 }
   0x4   :  { %13 = vsyncpa [#allocation3 + $0x1], 0 }
   0x5   :  { %14 = vsyncpa [#allocation6], 0 }
   0x6   :  { %16 = vsyncpa [#allocation6 + $0x1], 0 }
   0x7   :  { %17 = vsyncpa [#allocation9], 0 }
   0x8   :  { %18 = vsyncpa [#allocation4], 0 }
   0x9   :  { %20 = vsyncpa [#allocation4 + $0x1], 0  ;;  %s2572_s21 = smov 0   ;;  %s2574_s22 = smov 0  }
   0xa   :  { %s2576_s23 = smov 0   ;;  %s2578_s24 = smov 0  }
   0xb LB: > { %s2593_s25 = sadd.s32 4294967295, %s2517_s24   ;;  %s2029_s26 = sadd.s32 4294967294, %s2517_s24   ;;  %s2517_s24 = sphi %s2578_s24, %s3053_s24   ;;  %s2513_s23 = sphi %s2576_s23, %s3052_s23   ;;  %s2509_s22 = sphi %s2574_s22, %s3051_s22   ;;  %s2505_s21 = sphi %s2572_s21, %s3050_s21  }
   0xc   : > { %p46_p0 = scmp.ne.s32.totalorder %s2509_s22, %s2505_s21  ;;  %p3024_p1 = scmp.eq.s32.totalorder %s2593_s25, 0 }
   0xd   : > { %p186_p3 = scmp.eq.s32.totalorder %s2029_s26, 1  ;;  %p2030_p5 = scmp.ge.s32.totalorder %s2517_s24, 1 }
   0xe   : > { %p2602_p4 = por %p3024_p1, %p46_p0  ;;  %p193_p7 = scmp.lt.s32.totalorder %s2517_s24, 3 }
   0xf   : > { %p2607_p6 = por %p186_p3, %p46_p0  ;;  %s2519_s30 = smov [#allocation7]  }
  0x10   : > { %s3030_s27 = scalar_select %p2602_p4, 1, 0 }
  0x11   : > { %s3031_s28 = scalar_select %p2607_p6, 1, 0 }
  0x12   : > { %p2612_p8 = pnand %p2030_p5, %p193_p7  ;;  %s205_s7 = sshll.u32 %s2519_s30, 4  ;;  %s2616_s7 = int_to_ptr.vmem [resolvable:$true] %s205_s7 }
  0x13   : > { %s2520_s9 = smov [#allocation8]   ;;  %s3034_s2 = sld [smem:[#allocation17_spill]] }
  0x14   : > { %s3032_s29 = scalar_select %p2612_p8, 1, 0 }
  0x15   : > { %p2236_p9 = pneg %p2612_p8  ;;  %s221_s10 = sshll.u32 %s2520_s9, 4  ;;  %s2627_s10 = int_to_ptr.vmem [resolvable:$true] %s221_s10 }
  0x17   : > { %p2623_p11 = pnand %p2236_p9, %p3024_p1 }
  0x19   : > { %s2323_s13 = scalar_lea.hbm %s3034_s2, 1536  ;;  %p2325_p13 = pneg %p2623_p11 }
  0x1a   : > { %p2324_p12 = scmp.ne.s32.totalorder %s3034_s2, %s2323_s13  ;;  %p2330_p5 = scmp.lt.u32.totalorder %s2323_s13, %s3034_s2 }
  0x1c   : > { %p2326_p0 = pnand %p2325_p13, %p2324_p12 }
  0x1e   : > { %p2327_p3 = pneg %p2326_p0 }
  0x20   : > { %p2332_p7 = pnand %p2330_p5, %p2327_p3 }
  0x22   : > { %2335 = shalt.err (!%p2332_p7)
}
  0x23   : > { %s2336_s18 = scalar_lea.vmem %s2616_s7, 1536  ;;  %p2344_p2 = scmp.lt.s32.totalorder %s2616_s7, %s2616_s7 }
  0x24   : > { %p2337_p9 = scmp.ne.s32.totalorder %s2616_s7, %s2336_s18  ;;  %p2345_p12 = scmp.lt.s32.totalorder %s2336_s18, %s2336_s18 }
  0x26   : > { %p2339_p10 = pnand %p2337_p9, %p2325_p13  ;;  %p2346_p0 = por %p2345_p12, %p2344_p2 }
  0x28   : > { %p2340_p1 = pneg %p2339_p10 }
  0x2a   : > { %p2347_p6 = pnand %p2346_p0, %p2340_p1 }
  0x2c   : > { %2350 = shalt.err (!%p2347_p6)
}
  0x2d   : > { %s2521_s19 = smov 128   ;;  %s2522_s20 = smov 8  }
  0x2e   : > { %2239 = dma.hbm_to_vmem [thread:$0]  (!%p2623_p11), %s3034_s2, 1536, %s2616_s7, [#allocation6], %s2521_s19, %s2521_s19, %s2522_s20  }
  0x2f   : > { %s3035_s4 = sld [smem:[#allocation18_spill]] }
  0x35   : > { %s2351_s12 = scalar_lea.hbm %s3035_s4, 512 }
  0x36   : > { %p2352_p2 = scmp.ne.s32.totalorder %s3035_s4, %s2351_s12  ;;  %p2358_p10 = scmp.lt.u32.totalorder %s2351_s12, %s3035_s4 }
  0x38   : > { %p2354_p1 = pnand %p2352_p2, %p2325_p13 }
  0x3a   : > { %p2355_p6 = pneg %p2354_p1 }
  0x3c   : > { %p2360_p3 = pnand %p2358_p10, %p2355_p6 }
  0x3e   : > { %2363 = shalt.err (!%p2360_p3)
}
  0x3f   : > { %s2364_s7 = scalar_lea.vmem %s2627_s10, 512  ;;  %p2372_p12 = scmp.lt.s32.totalorder %s2627_s10, %s2627_s10 }
  0x40   : > { %p2365_p5 = scmp.ne.s32.totalorder %s2627_s10, %s2364_s7  ;;  %p2373_p0 = scmp.lt.s32.totalorder %s2364_s7, %s2364_s7 }
  0x42   : > { %p2367_p7 = pnand %p2365_p5, %p2325_p13  ;;  %p2374_p2 = por %p2373_p0, %p2372_p12 }
  0x44   : > { %p2368_p9 = pneg %p2367_p7 }
  0x46   : > { %p2375_p1 = pnand %p2374_p2, %p2368_p9 }
  0x48   : > { %2378 = shalt.err (!%p2375_p1)
}
  0x49   : > { %2242 = dma.hbm_to_vmem [thread:$0]  (!%p2623_p11), %s3035_s4, 512, %s2627_s10, [#allocation9], %s2521_s19, %s2521_s19, %s2522_s20  }
  0x4a   : > { %s2682_s26 = sadd.s32 1, %s2517_s24   ;;  %s33_s8 = sadd.s32 1, %s2513_s23 }
  0x4b   : > { %s30_s30 = ssub.s32 %s2517_s24, %s2682_s26  ;;  %p40_p13 = scmp.ne.s32.totalorder %s2513_s23, %s2509_s22 }
  0x4c   : > { %p31_p6 = scmp.eq.s32.totalorder %s30_s30, 0  ;;  %p41_p10 = scmp.eq.s32.totalorder %s2517_s24, 0 }
  0x4d   : > { %p3036_p3 = scmp.eq.s32.totalorder %s2593_s25, 1  ;;  %p2256_p7 = scmp.lt.s32.totalorder %s2517_s24, 2 }
  0x4e   : > { %s2698_s11 = scalar_select %p31_p6, %s2513_s23, %s33_s8  }
  0x4f   : > { %p2692_p5 = por %p3036_p3, %p40_p13  ;;  %p42_p9 = por %p41_p10, %p40_p13 }
  0x50   : > { %3038 = sst [smem:[#allocation16_spill]] %s2698_s11  ;;  %s238_s12 = sand.u32 1, %s2513_s23  }
  0x51   : > { %s3037_s9 = scalar_select %p2692_p5, 1, 0 }
  0x52   : > { %s2701_s10 = sshll.u32 %s238_s12, 3  ;;  %s2035_s19 = sshll.u32 %s2517_s24, 7 }
  0x53   : > { %s2707_s14 = scalar_lea.hbm %s3017_s0, %s2035_s19  ;;  %s242_s15 = scalar_lea.vmem [#allocation2], %s2701_s10 }
  0x54   : > { %s249_s16 = sshll.u32 %s242_s15, 4  ;;  %p2712_p11 = pnand %p2256_p7, %p42_p9  ;;  %s2710_s16 = int_to_ptr.vmem [resolvable:$true] %s249_s16 }
  0x55   : > { %s2719_s8 = scalar_lea.hbm %s3018_s1, %s2035_s19  ;;  %s256_s30 = sand.u32 1, %s2517_s24  }
  0x56   : > { %s239_s20 = scalar_lea.sflag [#allocation3], %s238_s12  ;;  %s2379_s13 = scalar_lea.hbm %s2707_s14, 128 }
  0x57   : > { %p2380_p12 = scmp.ne.s32.totalorder %s2707_s14, %s2379_s13  ;;  %p2381_p0 = pneg %p2712_p11 }
  0x58   : > { %s2384_s4 = scalar_lea.hbm %s3017_s0, 256  ;;  %p2385_p13 = scmp.lt.u32.totalorder %s2707_s14, %s3017_s0 }
  0x59   : > { %p2382_p2 = pnand %p2381_p0, %p2380_p12  ;;  %p2386_p6 = scmp.lt.u32.totalorder %s2384_s4, %s2379_s13 }
  0x5a   : > { %p2388_p3 = scmp.lt.u32.totalorder %s2379_s13, %s2707_s14 }
  0x5b   : > { %p2383_p1 = pneg %p2382_p2  ;;  %p2387_p10 = por %p2386_p6, %p2385_p13 }
  0x5d   : > { %p2389_p7 = por %p2388_p3, %p2387_p10 }
  0x5f   : > { %p2390_p9 = pnand %p2389_p7, %p2383_p1 }
  0x61   : > { %2393 = shalt.err (!%p2390_p9)
}
  0x62   : > { %s2394_s12 = scalar_lea.vmem %s2710_s16, 128  ;;  %s2523_s2 = smov [#allocation2]  }
  0x63   : > { %p2395_p12 = scmp.ne.s32.totalorder %s2710_s16, %s2394_s12  ;;  %s2399_s19 = sshll.u32 %s2523_s2, 4  ;;  %s2400_s19 = int_to_ptr.vmem [resolvable:$false] %s2399_s19 }
  0x64   : > { %s2401_s11 = scalar_lea.vmem %s2400_s19, 256  ;;  %p2402_p4 = scmp.lt.s32.totalorder %s2710_s16, %s2400_s19 }
  0x65   : > { %p2397_p2 = pnand %p2395_p12, %p2381_p0  ;;  %p2403_p13 = scmp.lt.s32.totalorder %s2401_s11, %s2394_s12 }
  0x67   : > { %p2398_p5 = pneg %p2397_p2  ;;  %p2404_p6 = por %p2403_p13, %p2402_p4 }
  0x69   : > { %p2405_p10 = pnand %p2404_p6, %p2398_p5 }
  0x6b   : > { %2408 = shalt.err (!%p2405_p10)
}
  0x6c   : > { %2246 = dma.hbm_to_vmem [thread:$0]  (!%p2712_p11), %s2707_s14, 128, %s2710_s16, %s239_s20  }
  0x6d   : > { %s260_s4 = scalar_lea.vmem [#allocation5], %s2701_s10  ;;  %s257_s13 = scalar_lea.sflag [#allocation6], %s256_s30 }
  0x6e   : > { %s267_s18 = sshll.u32 %s260_s4, 4  ;;  %s2409_s15 = scalar_lea.hbm %s2719_s8, 128  ;;  %s268_s18 = int_to_ptr.vmem [resolvable:$true] %s267_s18 }
  0x6f   : > { %p2410_p4 = scmp.ne.s32.totalorder %s2719_s8, %s2409_s15  ;;  %s2414_s2 = scalar_lea.hbm %s3018_s1, 256 }
  0x70   : > { %p2415_p3 = scmp.lt.u32.totalorder %s2719_s8, %s3018_s1  ;;  %p2416_p7 = scmp.lt.u32.totalorder %s2414_s2, %s2409_s15 }
  0x71   : > { %p2412_p5 = pnand %p2410_p4, %p2381_p0  ;;  %p2418_p12 = scmp.lt.u32.totalorder %s2409_s15, %s2719_s8 }
  0x72   : > { %p2417_p9 = por %p2416_p7, %p2415_p3 }
  0x73   : > { %p2413_p1 = pneg %p2412_p5 }
  0x74   : > { %p2419_p2 = por %p2418_p12, %p2417_p9 }
  0x76   : > { %p2420_p13 = pnand %p2419_p2, %p2413_p1 }
  0x78   : > { %2423 = shalt.err (!%p2420_p13)
}
  0x79   : > { %s2424_s10 = scalar_lea.vmem %s268_s18, 128  ;;  %s2524_s14 = smov [#allocation5]  }
  0x7a   : > { %p2425_p6 = scmp.ne.s32.totalorder %s268_s18, %s2424_s10  ;;  %s2429_s16 = sshll.u32 %s2524_s14, 4  ;;  %s2430_s16 = int_to_ptr.vmem [resolvable:$false] %s2429_s16 }
  0x7b   : > { %s2431_s30 = scalar_lea.vmem %s2430_s16, 256  ;;  %p2432_p5 = scmp.lt.s32.totalorder %s268_s18, %s2430_s16 }
  0x7c   : > { %p2427_p10 = pnand %p2425_p6, %p2381_p0  ;;  %p2433_p8 = scmp.lt.s32.totalorder %s2431_s30, %s2424_s10 }
  0x7e   : > { %p2428_p4 = pneg %p2427_p10  ;;  %p2434_p3 = por %p2433_p8, %p2432_p5 }
  0x80   : > { %p2435_p7 = pnand %p2434_p3, %p2428_p4 }
  0x82   : > { %2438 = shalt.err (!%p2435_p7)
}
  0x83   : > { %2249 = dma.hbm_to_vmem [thread:$0]  (!%p2712_p11), %s2719_s8, 128, %s268_s18, %s257_s13  }
  0x84   : > { %p3040_p1 = scmp.ne.s32.totalorder %s3032_s29, 0 }
  0x85   : > { %s2772_s20 = sand.u32 (!%p3040_p1), 1, %s2509_s22   ;;  %p3041_p8 = scmp.ne.s32.totalorder (!%p3040_p1), %s3030_s27, 0 }
  0x86   : > { %276 = sbr.rel (%p3040_p1) target bundleno = 1651 (0x673), region = 44  ;;  %s2775_s4 = sshll.u32 (!%p3040_p1), %s2772_s20, 3 }
  0x87   : > { %s279_s15 = scalar_lea.sflag (!%p3040_p1), [#allocation3], %s2772_s20  ;;  %s282_s17 = scalar_lea.vmem (!%p3040_p1), [#allocation2], %s2775_s4 }
  0x8d   : > { %2484 = dma.done.wait (%p3041_p8), %s279_s15, 128  }
  0x8e   : > { %2486 = vsyncadd (%p3041_p8), %s279_s15, 4294967168  ;;  %s287_s29 = sand.u32 1, %s2593_s25   ;;  %s291_s8 = scalar_lea.vmem [#allocation5], %s2775_s4 }
  0x8f   : > { %s288_s7 = scalar_lea.sflag [#allocation6], %s287_s29 }
  0x90   : > { %2488 = dma.done.wait (%p3041_p8), %s288_s7, 128  }
  0x91   : > { %2490 = vsyncadd (%p3041_p8), %s288_s7, 4294967168  ;;  %p3042_p11 = scmp.eq.s32.totalorder %s2593_s25, 0 }
  0x93   : > { %2492 = dma.done.wait (%p3042_p11), [#allocation6], 1536   ;;  %p3043_p0 = pmov %p3042_p11 }
  0x95   : > { %2494 = vsyncadd (%p3043_p0), [#allocation6], 4294965760  ;;  %p3044_p9 = pmov %p3043_p0 }
  0x96   : > { %p3045_p12 = pmov %p3043_p0 }
  0x97   : > { %2496 = dma.done.wait (%p3044_p9), [#allocation9], 512  }
  0x98   : > { %2498 = vsyncadd (%p3045_p12), [#allocation9], 4294966784  ;;  %v2525_v0 = vmov 0.0|0.0   ;;  %vm2526_vm0 = vmmov 0   ;;  %v2527_v1 = vmov 0.0   ;;  %v420_v2 = vld [vmem:[#allocation7 + $0x20] sm:$0xff]  ;;  %v600_v31 = vlaneseq }
  0x99   : > { %2204 = vmatprep.subr.bf16.mxu1 %v2525_v0  ;;  %2198 = vmatprep.subr.bf16.mxu0 %v2525_v0  ;;  %v421_v3 = vld [vmem:[#allocation7 + $0x28] sm:$0xff]  ;;  %v334_v4 = vld [vmem:[#allocation7] sm:$0xff]  ;;  %v422_v7 = vld [vmem:[#allocation7 + $0x30] sm:$0xff]  ;;  %vm345_vm1 = vcmask 261120   ;;  %s2528_s2 = smov 104   ;;  %s2529_s19 = smov 120  }
  0x9a   : > { %2133 = vmatprep.mubr.msk.f32.mxu1 %vm2526_vm0, %v2527_v1  ;;  %2122 = vmatprep.mubr.msk.f32.mxu0 %vm2526_vm0, %v2527_v1  ;;  %v2205_v5 = vpack.c.bf16 %v421_v3, %v420_v2  ;;  %v335_v6 = vld [vmem:[#allocation7 + $0x8] sm:$0xff]  ;;  %v423_v8 = vld [vmem:[#allocation7 + $0x38] sm:$0xff]  ;;  %v336_v10 = vld [vmem:[#allocation7 + $0x10] sm:$0xff]  ;;  %s2530_s11 = smov 112   ;;  %v2531_v29 = vmov 1983009808  }
  0x9b   : > { %v2199_v9 = vpack.c.bf16 %v335_v6, %v334_v4  ;;  %v337_v11 = vld [vmem:[#allocation7 + $0x18] sm:$0xff]  ;;  %v2208_v12 = vpack.c.bf16 %v423_v8, %v422_v7  ;;  %v333_v14 = vld [vmem:[%s282_s17] sm:$0xff]  ;;  %v505_v25 = vld [vmem:[#allocation7 + $0x50] sm:$0xff]  ;;  %v598_v30 = vunpack.c.l.s4 %v2531_v29  ;;  %v2532_v32 = vmov 1934713408   ;;  %s2533_s16 = smov 16  }
  0x9c   : > { %2206 = vmatpush3.bf16.msra.mxu1 %v2205_v5  ;;  %v2202_v13 = vpack.c.bf16 %v337_v11, %v336_v10  ;;  %v2047_v15 = vld [vmem:[%s3020_s3 + $0x1] ss:$0 sm:$0xff]  ;;  %v2044_v17 = vld [vmem:[%s3020_s3] ss:$0 sm:$0xff]  ;;  %v504_v24 = vld [vmem:[#allocation7 + $0x48] sm:$0xff]  ;;  %v630_v33 = vunpack.c.l.s4 %v2532_v32  ;;  %v601_v35 = vshrl.u32 %v600_v31, 7 }
  0x9d   : > { %2200 = vmatpush3.bf16.msra.mxu0 %v2199_v9  ;;  %2207 = vmatprep.subr.bf16.mxu1 %v2525_v0  ;;  %v503_v23 = vld [vmem:[#allocation7 + $0x40] sm:$0xff]  ;;  %v506_v27 = vld [vmem:[#allocation7 + $0x58] sm:$0xff]  ;;  %v599_v34 = vunpack.c.0.s8 %v598_v30  ;;  %vm1024_vm2 = vcmask 64512   ;;  %s2534_s30 = smov 8   ;;  %s2535_s15 = smov 24   ;;  %vm1814_vm3 = vcmask 130048  }
  0x9e   : > { %2201 = vmatprep.subr.bf16.mxu0 %v2525_v0  ;;  %v2211_v26 = vpack.c.bf16 %v504_v24, %v503_v23  ;;  %v2214_v28 = vpack.c.bf16 %v506_v27, %v505_v25  ;;  %v631_v38 = vunpack.c.0.s8 %v630_v33  ;;  %vm1816_vm4 = vcmask 195584   ;;  %s2075_s7 = sshll.u32 %s2593_s25, 7  ;;  %p3046_p13 = scmp.ne.s32.totalorder %s3037_s9, 0 }
  0x9f   : > { %v2832_v39 = vsub.s32 %v599_v34, %v601_v35  ;;  %s2972_s12 = scalar_lea.hbm %s3023_s6, %s2075_s7  ;;  %s2536_s25 = smov [#allocation10]  }
  0xa0   : > { %2209 = vmatpush3.bf16.msra.mxu1 %v2208_v12  ;;  %v2834_v46 = vsub.s32 %v631_v38, %v601_v35 }
  0xa1   : > { %2203 = vmatpush3.bf16.msra.mxu0 %v2202_v13  ;;  %2147 = vmatprep.subr.mxu1 %v2527_v1 }
  0xa2   : > { %2210 = vmatprep.subr.bf16.mxu0 %v2525_v0 }
  0xa3   : > { %2134 = vmatmul.mubr.msk.f32.vlgmr.msra.gmra.mrb[0].mxu1 %vm345_vm1, %v333_v14 }
  0xa4   : > { %2123 = vmatmul.mubr.msk.f32.vlgmr.msra.gmra.mrb[0].mxu0 %vm345_vm1, %v333_v14  ;;  %2149 = vmatprep.mubr.msk.f32.mxu1 %vm2526_vm0, %v2527_v1 }
  0xa5   : > { %2144 = vmatprep.mubr.msk.f32.mxu0 %vm2526_vm0, %v2527_v1  ;;  %2212 = vmatpush3.bf16.msra.mxu0 %v2211_v26 }
  0xa6   : > { %2213 = vmatprep.subr.bf16.mxu0 %v2525_v0 }
  0xa9   : > { %2215 = vmatpush3.bf16.msra.mxu0 %v2214_v28 }
  0xaa   : > { %2167 = vmatprep.subr.mxu0 %v2527_v1 }
  0xac   : > { %2145 = vmatmul.mubr.msk.f32.vlgmr.msra.gmra.mrb[2].mxu0 %vm345_vm1, %v333_v14 }
  0xad   : > { %2169 = vmatprep.mubr.msk.f32.mxu0 %vm2526_vm0, %v2527_v1 }
 0x176   : > { %v498_v16 = vpop.f32.mrb[0].mxu1 }
 0x177   : > { %v499_v18 = vadd.f32 %v2047_v15, %v498_v16  ;;  %v2135_v19 = vpop.f32.mrb[1].mxu1  ;;  %v415_v20 = vpop.f32.mrb[0].mxu0 }
 0x178   : > { %v2124_v21 = vpop.f32.mrb[1].mxu0  ;;  %v416_v22 = vadd.f32 %v2044_v17, %v415_v20 }
 0x179   : > { %738 = vrot.lane.b32.xlu1 %v499_v18, %s2528_s2  ;;  %732 = vrot.lane.b32.xlu0 %v499_v18, %s2529_s19 }
 0x17d   : > { %735 = vrot.lane.b32.xlu0 %v499_v18, %s2530_s11  ;;  %586 = vrot.lane.b32.xlu1 %v416_v22, %s2529_s19 }
 0x181   : > { %589 = vrot.lane.b32.xlu0 %v416_v22, %s2530_s11  ;;  %592 = vrot.lane.b32.xlu1 %v416_v22, %s2528_s2 }
 0x1eb   : > { %v739_v36 = vpop.permute.xlu1 %738  ;;  %v733_v37 = vpop.permute.xlu0 %732 }
 0x1ec   : > { %v757_v40 = vcombine.low %v733_v37, %v739_v36  ;;  %v758_v41 = vcombine.high %v733_v37, %v739_v36 }
 0x1ee   : > { %v765_v47 = vrot.slane %v757_v40, %v2832_v39  ;;  %v772_v48 = vrot.slane %v758_v41, %v2832_v39 }
 0x1ef   : > { %v736_v42 = vpop.permute.xlu0 %735  ;;  %v587_v43 = vpop.permute.xlu1 %586 }
 0x1f0   : > { %v741_v44 = vcombine.low %v499_v18, %v736_v42  ;;  %v742_v45 = vcombine.high %v499_v18, %v736_v42 }
 0x1f2   : > { %v749_v49 = vrot.slane %v741_v44, %v2832_v39  ;;  %v756_v50 = vrot.slane %v742_v45, %v2832_v39 }
 0x1f3   : > { %v590_v51 = vpop.permute.xlu0 %589  ;;  %v593_v52 = vpop.permute.xlu1 %592 }
 0x1f4   : > { %v773_v53 = vcombine.low %v749_v49, %v765_v47  ;;  %v774_v54 = vcombine.high %v749_v49, %v765_v47  ;;  %v789_v55 = vcombine.low %v756_v50, %v772_v48  ;;  %v790_v56 = vcombine.high %v756_v50, %v772_v48 }
 0x1f5   : > { %v595_v57 = vcombine.low %v416_v22, %v590_v51  ;;  %v596_v58 = vcombine.high %v416_v22, %v590_v51  ;;  %v611_v59 = vcombine.low %v587_v43, %v593_v52  ;;  %v612_v60 = vcombine.high %v587_v43, %v593_v52 }
 0x1f6   : > { %v781_v61 = vrot.slane %v773_v53, %v2834_v46  ;;  %v788_v62 = vrot.slane %v774_v54, %v2834_v46  ;;  %v797_v63 = vrot.slane %v789_v55, %v2834_v46  ;;  %v804_v2 = vrot.slane %v790_v56, %v2834_v46 }
 0x1f7   : > { %v603_v3 = vrot.slane %v595_v57, %v2832_v39  ;;  %v610_v4 = vrot.slane %v596_v58, %v2832_v39  ;;  %v619_v5 = vrot.slane %v611_v59, %v2832_v39  ;;  %v626_v6 = vrot.slane %v612_v60, %v2832_v39  ;;  %v581_v57 = vpop.f32.mrb[2].mxu0  ;;  %v1023_v59 = vld [vmem:[%s291_s8] sm:$0xff]  ;;  %s332_s8 = scalar_lea.vmem [#allocation10], %s2775_s4  ;;  %s2443_s4 = sshll.u32 %s2536_s25, 4  ;;  %s2444_s4 = int_to_ptr.vmem [resolvable:$false] %s2443_s4 }
 0x1f8   : > { %v809_v7 = vcombine.low %v781_v61, %v788_v62  ;;  %v2054_v8 = vcombine.high %v781_v61, %v788_v62  ;;  %v825_v9 = vcombine.low %v797_v63, %v804_v2  ;;  %v2055_v10 = vcombine.high %v797_v63, %v804_v2  ;;  %v2146_v58 = vpop.f32.mrb[3].mxu0  ;;  %s1917_s27 = sshll.u32 %s332_s8, 4  ;;  %s2974_s27 = int_to_ptr.vmem [resolvable:$true] %s1917_s27 }
 0x1f9   : > { %v627_v11 = vcombine.low %v603_v3, %v619_v5  ;;  %v628_v12 = vcombine.high %v603_v3, %v619_v5  ;;  %v643_v13 = vcombine.low %v610_v4, %v626_v6  ;;  %v644_v14 = vcombine.high %v610_v4, %v626_v6  ;;  %p2446_p4 = scmp.lt.s32.totalorder %s2974_s27, %s2444_s4 }
 0x1fa   : > { %v816_v15 = vrot.slane %v809_v7, %v2832_v39  ;;  %v824_v16 = vrot.slane %v2054_v8, %v2832_v39  ;;  %v832_v17 = vrot.slane %v825_v9, %v2832_v39  ;;  %v840_v18 = vrot.slane %v2055_v10, %v2832_v39 }
 0x1fb   : > { %v635_v19 = vrot.slane %v627_v11, %v2834_v46  ;;  %v642_v20 = vrot.slane %v628_v12, %v2834_v46  ;;  %v651_v21 = vrot.slane %v643_v13, %v2834_v46  ;;  %v658_v22 = vrot.slane %v644_v14, %v2834_v46  ;;  %v2050_v14 = vld [vmem:[%s3020_s3 + $0x2] ss:$0 sm:$0xff] }
 0x1fc   : > { %v841_v23 = vcombine.low %v816_v15, %v824_v16  ;;  %v857_v24 = vcombine.low %v832_v17, %v840_v18  ;;  %v842_v38 = vcombine.high %v816_v15, %v824_v16  ;;  %v858_v40 = vcombine.high %v832_v17, %v840_v18 }
 0x1fd   : > { %v663_v25 = vcombine.low %v635_v19, %v642_v20  ;;  %v2052_v26 = vcombine.high %v635_v19, %v642_v20  ;;  %v679_v27 = vcombine.low %v651_v21, %v658_v22  ;;  %v2053_v28 = vcombine.high %v651_v21, %v658_v22 }
 0x1fe   : > { %v849_v29 = vrot.slane %v841_v23, %v2834_v46  ;;  %v865_v30 = vrot.slane %v857_v24, %v2834_v46  ;;  %v856_v48 = vrot.slane %v842_v38, %v2834_v46  ;;  %v872_v49 = vrot.slane %v858_v40, %v2834_v46 }
 0x1ff   : > { %v670_v31 = vrot.slane %v663_v25, %v2832_v39  ;;  %v678_v32 = vrot.slane %v2052_v26, %v2832_v39  ;;  %v686_v33 = vrot.slane %v679_v27, %v2832_v39  ;;  %v694_v34 = vrot.slane %v2053_v28, %v2832_v39 }
 0x200   : > { %v873_v35 = vcombine.low %v849_v29, %v865_v30  ;;  %v874_v47 = vcombine.high %v849_v29, %v865_v30  ;;  %v875_v53 = vcombine.low %v856_v48, %v872_v49  ;;  %v876_v55 = vcombine.high %v856_v48, %v872_v49 }
 0x201   : > { %v695_v36 = vcombine.low %v670_v31, %v678_v32  ;;  %v711_v37 = vcombine.low %v686_v33, %v694_v34  ;;  %v696_v43 = vcombine.high %v670_v31, %v678_v32  ;;  %v712_v44 = vcombine.high %v686_v33, %v694_v34 }
 0x202   : > { %2148 = vmatpush3.xpose.msk.msra.mxu1 %vm1024_vm2, %v873_v35  ;;  %v582_v15 = vadd.f32 %v2050_v14, %v581_v57 }
 0x203   : > { %2152 = vmatprep.subr.mxu1 %v2527_v1  ;;  %v703_v41 = vrot.slane %v695_v36, %v2834_v46  ;;  %v719_v42 = vrot.slane %v711_v37, %v2834_v46  ;;  %v710_v51 = vrot.slane %v696_v43, %v2834_v46  ;;  %v726_v52 = vrot.slane %v712_v44, %v2834_v46 }
 0x205   : > { %v727_v45 = vcombine.low %v703_v41, %v719_v42  ;;  %v728_v50 = vcombine.high %v703_v41, %v719_v42  ;;  %v729_v54 = vcombine.low %v710_v51, %v726_v52  ;;  %v730_v56 = vcombine.high %v710_v51, %v726_v52 }
 0x207   : > { %2150 = vmatmul.mubr.msk.f32.vlgmr.msra.gmra.mrb[2].mxu1 %vm1024_vm2, %v727_v45 }
 0x208   : > { %2153 = vmatpush3.xpose.msk.msra.mxu1 %vm1024_vm2, %v874_v47  ;;  %2154 = vmatprep.mubr.msk.f32.mxu1 %vm2526_vm0, %v2527_v1 }
 0x209   : > { %2157 = vmatprep.subr.mxu1 %v2527_v1 }
 0x20b   : > { %2155 = vmatmul.mubr.msk.f32.vlgmr.msra.gmra.mrb[4].mxu1 %vm1024_vm2, %v728_v50 }
 0x20c   : > { %2158 = vmatpush3.xpose.msk.msra.mxu1 %vm1024_vm2, %v875_v53  ;;  %2159 = vmatprep.mubr.msk.f32.mxu1 %vm2526_vm0, %v2527_v1 }
 0x20d   : > { %2162 = vmatprep.subr.mxu1 %v2527_v1 }
 0x20f   : > { %2160 = vmatmul.mubr.msk.f32.vlgmr.msra.gmra.mrb[6].mxu1 %vm1024_vm2, %v729_v54 }
 0x210   : > { %2163 = vmatpush3.xpose.msk.msra.mxu1 %vm1024_vm2, %v876_v55  ;;  %2164 = vmatprep.mubr.msk.f32.mxu1 %vm2526_vm0, %v2527_v1 }
 0x211   : > { %2172 = vmatprep.subr.mxu1 %v2527_v1 }
 0x213   : > { %2165 = vmatmul.mubr.msk.f32.vlgmr.msra.gmra.mrb[8].mxu1 %vm1024_vm2, %v730_v56 }
 0x214   : > { %2174 = vmatprep.mubr.msk.f32.mxu1 %vm2526_vm0, %v2527_v1 }
 0x2da   : > { %v1097_v60 = vpop.f32.mrb[2].mxu1 }
 0x2db   : > { %v1098_v61 = vadd.f32 %v1097_v60, %v1023_v59  ;;  %v2151_v62 = vpop.f32.mrb[3].mxu1 }
 0x2dd   : > { %v1329_v63 = vsel %vm1024_vm2, %v1098_v61, -inf }
 0x2de   : > { %1330 = vmax.xlane.f32.xlu0 %v1329_v63  ;;  %v1173_v2 = vpop.f32.mrb[4].mxu1 }
 0x2df   : > { %v1174_v3 = vadd.f32 %v1173_v2, %v1023_v59  ;;  %v2156_v4 = vpop.f32.mrb[5].mxu1 }
 0x2e1   : > { %v1332_v5 = vsel %vm1024_vm2, %v1174_v3, -inf }
 0x2e2   : > { %1333 = vmax.xlane.f32.xlu1 %v1332_v5  ;;  %v1249_v6 = vpop.f32.mrb[6].mxu1 }
 0x2e3   : > { %v1250_v7 = vadd.f32 %v1249_v6, %v1023_v59  ;;  %v2161_v8 = vpop.f32.mrb[7].mxu1 }
 0x2e5   : > { %v1335_v9 = vsel %vm1024_vm2, %v1250_v7, -inf }
 0x2e6   : > { %1336 = vmax.xlane.f32.xlu0 %v1335_v9  ;;  %v1325_v10 = vpop.f32.mrb[8].mxu1 }
 0x2e7   : > { %v1326_v11 = vadd.f32 %v1325_v10, %v1023_v59  ;;  %v2166_v12 = vpop.f32.mrb[9].mxu1 }
 0x2e9   : > { %v1338_v13 = vsel %vm1024_vm2, %v1326_v11, -inf }
 0x2ea   : > { %1339 = vmax.xlane.f32.xlu0 %v1338_v13 }
 0x2f3   : > { %878 = vrot.lane.b32.xlu1 %v582_v15, %s2529_s19  ;;  %s2439_s19 = scalar_lea.vmem %s2974_s27, 128 }
 0x2f4   : > { %p2440_p2 = scmp.ne.s32.totalorder %s2974_s27, %s2439_s19 }
 0x2f6   : > { %p2441_p6 = pnand %p2440_p2, %p3046_p13 }
 0x2f8   : > { %p2442_p10 = pneg %p2441_p6 }
 0x36b   : > { %v1331_v16 = vpop.xlane.xlu0 %1330 }
 0x36c   : > { %v1341_v17 = vsub.f32 %v1098_v61, %v1331_v16 }
 0x36e   : > { %v1345_v18 = vmul.f32 1.442695, %v1341_v17 }
 0x36f   : > { %v1334_v19 = vpop.xlane.xlu1 %1333 }
 0x370   : > { %2307 = vpow2.f32 %v1345_v18  ;;  %v1342_v20 = vsub.f32 %v1174_v3, %v1334_v19 }
 0x372   : > { %v1347_v21 = vmul.f32 1.442695, %v1342_v20 }
 0x373   : > { %v1337_v22 = vpop.xlane.xlu0 %1336  ;;  %v879_v36 = vpop.permute.xlu1 %878 }
 0x374   : > { %2309 = vpow2.f32 %v1347_v21  ;;  %v1343_v23 = vsub.f32 %v1250_v7, %v1337_v22 }
 0x376   : > { %v1349_v24 = vmul.f32 1.442695, %v1343_v23 }
 0x377   : > { %v1340_v25 = vpop.xlane.xlu0 %1339 }
 0x378   : > { %2311 = vpow2.f32 %v1349_v24  ;;  %v1344_v26 = vsub.f32 %v1326_v11, %v1340_v25 }
 0x37a   : > { %v2898_v27 = vpop.eup %2307  ;;  %v1351_v28 = vmul.f32 1.442695, %v1344_v26 }
 0x37b   : > { %v1353_v29 = vsel %vm1024_vm2, %v2898_v27, 0.0 }
 0x37c   : > { %2313 = vpow2.f32 %v1351_v28  ;;  %1354 = vadd.xlane.f32.xlu1 %v1353_v29  ;;  %v1819_v28 = vld [vmem:[#allocation8 + $0x8] sm:$0xff] }
 0x37e   : > { %v2310_v30 = vpop.eup %2309 }
 0x37f   : > { %v1356_v31 = vsel %vm1024_vm2, %v2310_v30, 0.0 }
 0x380   : > { %1357 = vadd.xlane.f32.xlu0 %v1356_v31 }
 0x382   : > { %v2903_v32 = vpop.eup %2311 }
 0x383   : > { %v1359_v33 = vsel %vm1024_vm2, %v2903_v32, 0.0 }
 0x384   : > { %1360 = vadd.xlane.f32.xlu1 %v1359_v33 }
 0x386   : > { %v2907_v34 = vpop.eup %2313 }
 0x387   : > { %v1362_v35 = vsel %vm1024_vm2, %v2907_v34, 0.0 }
 0x388   : > { %1363 = vadd.xlane.f32.xlu0 %v1362_v35 }
 0x395   : > { %884 = vrot.lane.b32.xlu1 %v582_v15, %s2528_s2  ;;  %s1904_s2 = scalar_lea.sflag [#allocation4], %s2772_s20 }
 0x39e   : > { %881 = vrot.lane.b32.xlu0 %v582_v15, %s2530_s11  ;;  %s2445_s11 = scalar_lea.vmem %s2444_s4, 256 }
 0x39f   : > { %p2447_p5 = scmp.lt.s32.totalorder %s2445_s11, %s2439_s19 }
 0x3a1   : > { %p2448_p3 = por %p2447_p5, %p2446_p4 }
 0x3a3   : > { %p2449_p7 = pnand %p2448_p3, %p2442_p10 }
 0x409   : > { %v1355_v37 = vpop.xlane.xlu1 %1354 }
 0x40a   : > { %2315 = vrcp.f32 %v1355_v37 }
 0x40d   : > { %v1358_v38 = vpop.xlane.xlu0 %1357 }
 0x40e   : > { %2317 = vrcp.f32 %v1358_v38 }
 0x411   : > { %v1361_v40 = vpop.xlane.xlu1 %1360 }
 0x412   : > { %2319 = vrcp.f32 %v1361_v40 }
 0x414   : > { %v2316_v7 = vpop.eup %2315 }
 0x415   : > { %v1364_v41 = vpop.xlane.xlu0 %1363  ;;  %v885_v42 = vpop.permute.xlu1 %884  ;;  %v1369_v21 = vmul.f32 %v2316_v7, %v2898_v27  ;;  %v1818_v27 = vld [vmem:[#allocation8] sm:$0xff] }
 0x416   : > { %v903_v43 = vcombine.low %v879_v36, %v885_v42  ;;  %v904_v44 = vcombine.high %v879_v36, %v885_v42  ;;  %2321 = vrcp.f32 %v1364_v41  ;;  %v2217_v29 = vpack.c.bf16 %v1819_v28, %v1818_v27 }
 0x418   : > { %v911_v49 = vrot.slane %v903_v43, %v2832_v39  ;;  %v918_v50 = vrot.slane %v904_v44, %v2832_v39  ;;  %v2318_v12 = vpop.eup %2317 }
 0x419   : > { %v882_v45 = vpop.permute.xlu0 %881  ;;  %v1370_v22 = vmul.f32 %v2318_v12, %v2310_v30 }
 0x41a   : > { %v887_v47 = vcombine.low %v582_v15, %v882_v45  ;;  %v888_v48 = vcombine.high %v582_v15, %v882_v45 }
 0x41c   : > { %v895_v51 = vrot.slane %v887_v47, %v2832_v39  ;;  %v902_v52 = vrot.slane %v888_v48, %v2832_v39  ;;  %v2320_v15 = vpop.eup %2319 }
 0x41d   : > { %v1371_v25 = vmul.f32 %v2320_v15, %v2903_v32 }
 0x41e   : > { %v919_v53 = vcombine.low %v895_v51, %v911_v49  ;;  %v920_v54 = vcombine.high %v895_v51, %v911_v49  ;;  %v935_v55 = vcombine.low %v902_v52, %v918_v50  ;;  %v936_v56 = vcombine.high %v902_v52, %v918_v50  ;;  %v1820_v50 = vld [vmem:[#allocation8 + $0x10] sm:$0xff]  ;;  %v1821_v51 = vld [vmem:[#allocation8 + $0x18] sm:$0xff] }
 0x420   : > { %v927_v57 = vrot.slane %v919_v53, %v2834_v46  ;;  %v934_v58 = vrot.slane %v920_v54, %v2834_v46  ;;  %v943_v59 = vrot.slane %v935_v55, %v2834_v46  ;;  %v950_v60 = vrot.slane %v936_v56, %v2834_v46  ;;  %v2322_v20 = vpop.eup %2321 }
 0x421   : > { %v1372_v26 = vmul.f32 %v2322_v20, %v2907_v34  ;;  %v2220_v56 = vpack.c.bf16 %v1821_v51, %v1820_v50 }
 0x422   : > { %v955_v61 = vcombine.low %v927_v57, %v934_v58  ;;  %v2056_v62 = vcombine.high %v927_v57, %v934_v58  ;;  %v971_v63 = vcombine.low %v943_v59, %v950_v60  ;;  %v2057_v2 = vcombine.high %v943_v59, %v950_v60 }
 0x424   : > { %v962_v3 = vrot.slane %v955_v61, %v2832_v39  ;;  %v970_v4 = vrot.slane %v2056_v62, %v2832_v39  ;;  %v978_v5 = vrot.slane %v971_v63, %v2832_v39  ;;  %v986_v6 = vrot.slane %v2057_v2, %v2832_v39 }
 0x426   : > { %v987_v8 = vcombine.low %v962_v3, %v970_v4  ;;  %v1003_v9 = vcombine.low %v978_v5, %v986_v6  ;;  %v988_v10 = vcombine.high %v962_v3, %v970_v4  ;;  %v1004_v11 = vcombine.high %v978_v5, %v986_v6 }
 0x428   : > { %v995_v13 = vrot.slane %v987_v8, %v2834_v46  ;;  %v1011_v14 = vrot.slane %v1003_v9, %v2834_v46  ;;  %v1002_v16 = vrot.slane %v988_v10, %v2834_v46  ;;  %v1018_v17 = vrot.slane %v1004_v11, %v2834_v46 }
 0x42a   : > { %v1019_v18 = vcombine.low %v995_v13, %v1011_v14  ;;  %v1020_v19 = vcombine.high %v995_v13, %v1011_v14  ;;  %v1021_v23 = vcombine.low %v1002_v16, %v1018_v17  ;;  %v1022_v24 = vcombine.high %v1002_v16, %v1018_v17 }
 0x42c   : > { %2168 = vmatpush3.msra.mxu0 %v1019_v18  ;;  %2173 = vmatpush3.msra.mxu1 %v1020_v19  ;;  %v2072_v19 = vld [vmem:[%s3022_s5] ss:$0 sm:$0xff] }
 0x42d   : > { %2170 = vmatmul.mubr.msk.f32.vlgmr.msra.gmra.mrb[4].mxu0 %vm1024_vm2, %v1369_v21  ;;  %2175 = vmatmul.mubr.msk.f32.vlgmr.msra.gmra.mrb[10].mxu1 %vm1024_vm2, %v1370_v22 }
 0x42e   : > { %2177 = vmatprep.subr.mxu0 %v2527_v1  ;;  %2182 = vmatprep.subr.mxu1 %v2527_v1 }
 0x42f   : > { %2178 = vmatpush3.msra.mxu0 %v1021_v23  ;;  %2183 = vmatpush3.msra.mxu1 %v1022_v24 }
 0x430   : > { %2179 = vmatprep.mubr.msk.f32.mxu0 %vm2526_vm0, %v2527_v1  ;;  %2184 = vmatprep.mubr.msk.f32.mxu1 %vm2526_vm0, %v2527_v1 }
 0x431   : > { %2180 = vmatmul.mubr.msk.f32.vlgmr.msra.gmra.mrb[6].mxu0 %vm1024_vm2, %v1371_v25  ;;  %2185 = vmatmul.mubr.msk.f32.vlgmr.msra.gmra.mrb[12].mxu1 %vm1024_vm2, %v1372_v26 }
 0x432   : > { %2216 = vmatprep.subr.bf16.mxu0 %v2525_v0  ;;  %2195 = vmatprep.mubr.msk.f32.mxu0 %vm2526_vm0, %v2527_v1 }
 0x433   : > { %2218 = vmatpush3.bf16.msra.mxu0 %v2217_v29 }
 0x434   : > { %2219 = vmatprep.subr.bf16.mxu0 %v2525_v0 }
 0x437   : > { %2221 = vmatpush3.bf16.msra.mxu0 %v2220_v56 }
 0x500   : > { %v1442_v30 = vpop.f32.mrb[4].mxu0  ;;  %v1515_v31 = vpop.f32.mrb[10].mxu1 }
 0x501   : > { %v2171_v32 = vpop.f32.mrb[5].mxu0  ;;  %v2176_v33 = vpop.f32.mrb[11].mxu1 }
 0x504   : > { %v1588_v34 = vpop.f32.mrb[6].mxu0  ;;  %v1661_v35 = vpop.f32.mrb[12].mxu1 }
 0x505   : > { %v1665_v36 = vcombine.low %v1442_v30, %v1588_v34  ;;  %v1666_v37 = vcombine.high %v1442_v30, %v1588_v34  ;;  %v1681_v38 = vcombine.low %v1515_v31, %v1661_v35  ;;  %v1682_v40 = vcombine.high %v1515_v31, %v1661_v35  ;;  %v2181_v41 = vpop.f32.mrb[7].mxu0  ;;  %v2186_v42 = vpop.f32.mrb[13].mxu1 }
 0x507   : > { %v1673_v1 = vrot.slane %v1665_v36, %v2832_v39  ;;  %v1680_v43 = vrot.slane %v1666_v37, %v2832_v39  ;;  %v1689_v44 = vrot.slane %v1681_v38, %v2832_v39  ;;  %v1696_v0 = vrot.slane %v1682_v40, %v2832_v39 }
 0x509   : > { %v1697_v45 = vcombine.low %v1673_v1, %v1689_v44  ;;  %v1698_v47 = vcombine.high %v1673_v1, %v1689_v44  ;;  %v1713_v48 = vcombine.low %v1680_v43, %v1696_v0  ;;  %v1714_v49 = vcombine.high %v1680_v43, %v1696_v0 }
 0x50b   : > { %v1705_v52 = vrot.slane %v1697_v45, %v2834_v46  ;;  %v1712_v53 = vrot.slane %v1698_v47, %v2834_v46  ;;  %v1721_v54 = vrot.slane %v1713_v48, %v2834_v46  ;;  %v1728_v55 = vrot.slane %v1714_v49, %v2834_v46 }
 0x50d   : > { %v1733_v57 = vcombine.low %v1705_v52, %v1712_v53  ;;  %v2070_v58 = vcombine.high %v1705_v52, %v1712_v53  ;;  %v1749_v59 = vcombine.low %v1721_v54, %v1728_v55  ;;  %v2071_v60 = vcombine.high %v1721_v54, %v1728_v55 }
 0x50f   : > { %v1740_v61 = vrot.slane %v1733_v57, %v2832_v39  ;;  %v1748_v62 = vrot.slane %v2070_v58, %v2832_v39  ;;  %v1756_v63 = vrot.slane %v1749_v59, %v2832_v39  ;;  %v1764_v2 = vrot.slane %v2071_v60, %v2832_v39 }
 0x511   : > { %v1766_v3 = vcombine.high %v1740_v61, %v1748_v62  ;;  %v1782_v4 = vcombine.high %v1756_v63, %v1764_v2  ;;  %v1765_v5 = vcombine.low %v1740_v61, %v1748_v62  ;;  %v1781_v6 = vcombine.low %v1756_v63, %v1764_v2 }
 0x513   : > { %v1780_v7 = vrot.slane %v1766_v3, %v2834_v46  ;;  %v1796_v8 = vrot.slane %v1782_v4, %v2834_v46  ;;  %v1773_v9 = vrot.slane %v1765_v5, %v2834_v46  ;;  %v1789_v10 = vrot.slane %v1781_v6, %v2834_v46 }
 0x515   : > { %v1799_v11 = vcombine.low %v1780_v7, %v1796_v8  ;;  %v1798_v12 = vcombine.high %v1773_v9, %v1789_v10  ;;  %v1800_v13 = vcombine.high %v1780_v7, %v1796_v8  ;;  %v1797_v14 = vcombine.low %v1773_v9, %v1789_v10 }
 0x517   : > { %1806 = vrot.lane.b32.xlu0 %v1799_v11, %s2533_s16  ;;  %1802 = vrot.lane.b32.xlu1 %v1798_v12, %s2534_s30 }
 0x51b   : > { %1810 = vrot.lane.b32.xlu1 %v1800_v13, %s2535_s15 }
 0x589   : > { %v1803_v39 = vpop.permute.xlu1 %1802  ;;  %v1807_v15 = vpop.permute.xlu0 %1806 }
 0x58a   : > { %v1813_v16 = vsel %vm1024_vm2, %v1797_v14, %v1803_v39 }
 0x58b   : > { %v1815_v17 = vsel %vm1814_vm3, %v1813_v16, %v1807_v15 }
 0x58d   : > { %v1811_v46 = vpop.permute.xlu1 %1810 }
 0x58e   : > { %v1817_v18 = vsel %vm1816_vm4, %v1815_v17, %v1811_v46 }
 0x58f   : > { %2196 = vmatmul.mubr.msk.f32.vlgmr.msra.gmra.mrb[8].mxu0 %vm345_vm1, %v1817_v18 }
 0x662   : > { %v1898_v20 = vpop.f32.mrb[8].mxu0 }
 0x663   : > { %v1899_v21 = vadd.f32 %v2072_v19, %v1898_v20  ;;  %v2197_v22 = vpop.f32.mrb[9].mxu0 }
 0x665   : > { %1902 = vst.msk [vmem:[%s332_s8] sm:$0xff] %vm345_vm1, %v1899_v21 }
 0x666   : > { %2452 = shalt.err (!%p2449_p7)
}
 0x667   : > { %s2453_s20 = scalar_lea.hbm %s2972_s12, 128  ;;  %s2457_s16 = scalar_lea.hbm %s3023_s6, 256 }
 0x668   : > { %p2454_p1 = scmp.ne.s32.totalorder %s2972_s12, %s2453_s20  ;;  %p2458_p0 = scmp.lt.u32.totalorder %s2972_s12, %s3023_s6 }
 0x669   : > { %p2459_p9 = scmp.lt.u32.totalorder %s2457_s16, %s2453_s20  ;;  %p2461_p2 = scmp.lt.u32.totalorder %s2453_s20, %s2972_s12 }
 0x66a   : > { %p2455_p8 = pnand %p2454_p1, %p3046_p13 }
 0x66b   : > { %p2460_p12 = por %p2459_p9, %p2458_p0 }
 0x66c   : > { %p2456_p11 = pneg %p2455_p8 }
 0x66d   : > { %p2462_p6 = por %p2461_p2, %p2460_p12 }
 0x66f   : > { %p2463_p10 = pnand %p2462_p6, %p2456_p11 }
 0x671   : > { %2466 = shalt.err (!%p2463_p10)
}
 0x672   : > { %2234 = dma.vmem_to_hbm [thread:$0]  (%p3046_p13), %s2974_s27, 128, %s2972_s12, %s1904_s2  }
 0x673 PF: > { %s1929_s17 = sand.u32 1, %s2505_s21   ;;  %p3047_p4 = scmp.ne.s32.totalorder %s3031_s28, 0 }
 0x674   : > { %p3048_p5 = scmp.ge.s32.totalorder %s2517_s24, 2  ;;  %s1930_s29 = scalar_lea.sflag [#allocation4], %s1929_s17 }
 0x676   : > { %p2251_p3 = pnand %p3048_p5, %p3047_p4 }
 0x678   : > { %2500 = dma.done.wait (!%p2251_p3), %s1930_s29, 128  }
 0x679   : > { %2502 = vsyncadd (!%p2251_p3), %s1930_s29, 4294967168  ;;  %s3049_s7 = sld [smem:[#allocation16_spill]]  ;;  %p23_p7 = scmp.ge.s32.totalorder %s2682_s26, 4  }
 0x67a   : > { %s3050_s21 = smov %s2509_s22  ;;  %s3051_s22 = smov %s2513_s23 }
 0x67b   : > { %s3053_s24 = smov %s2682_s26  ;;  %25 = sbr.rel (!%p23_p7) target bundleno = 11 (0xb), region = 114 }
 0x67f   : > { %s3052_s23 = smov %s3049_s7 }
 0x682   :  { %1935 = vsyncpa [#allocation3], 1 }
 0x683   :  { %1937 = vsyncpa [#allocation3 + $0x1], 1 }
 0x684   :  { %1938 = vsyncpa [#allocation6], 1 }
 0x685   :  { %1940 = vsyncpa [#allocation6 + $0x1], 1 }
 0x686   :  { %1941 = vsyncpa [#allocation9], 1 }
 0x687   :  { %1942 = vsyncpa [#allocation4], 1 }
 0x688   :  { %1944 = vsyncpa [#allocation4 + $0x1], 1 }

</bundles_post_ra>
